<compile_context>
chip_gen: v5e
topology: v5e:2x2
jax: 0.10.0
libtpu: 0.0.40
codegen_flags: <defaults>
</compile_context>

<pallas_src>
import functools

import jax
import jax.numpy as jnp
from jax import lax
from jax.experimental import pallas as pl
from jax.experimental.pallas import tpu as pltpu

MC_SAMPLES = 50
DROPOUT_P = 0.25
OUT_FEAT = 8  # number of experts the gate scores


# ---------------------------------------------------------------------------
# Pallas kernel: batched MC-dropout FC head + softmax + partial MC mean.
# ---------------------------------------------------------------------------
def _mc_head_kernel(feat_ref, m1_ref, m2_ref, m3_ref,
                    w1_ref, b1_ref, w2_ref, b2_ref, w3_ref, b3_ref,
                    avg_ref, out_ref):
    # feat_ref: (TILE_M, 400) -- this tile's MC samples stacked on the M axis
    #           (all samples share the same features; they differ only via
    #            their dropout masks).
    # m*_ref:   pre-scaled dropout masks (0 or 1/keep_p) for this tile.
    h = feat_ref[...] * m1_ref[...]
    h = jnp.maximum(
        jnp.dot(h, w1_ref[...], preferred_element_type=jnp.float32) + b1_ref[...],
        0.0)
    h = h * m2_ref[...]
    h = jnp.maximum(
        jnp.dot(h, w2_ref[...], preferred_element_type=jnp.float32) + b2_ref[...],
        0.0)
    h = h * m3_ref[...]
    logits = (jnp.dot(h, w3_ref[...], preferred_element_type=jnp.float32)
              + b3_ref[...])

    # numerically stable softmax over experts
    m = jnp.max(logits, axis=-1, keepdims=True)
    e = jnp.exp(logits - m)
    probs = e / jnp.sum(e, axis=-1, keepdims=True)

    # Partial MC mean for this sample tile via a tiny averaging matmul:
    # (N, TILE_M) @ (TILE_M, E) -> (N, E).  avg carries the 1/n_samples
    # weight, so summing the per-tile outputs gives the full MC mean.
    out_ref[...] = jnp.dot(avg_ref[...], probs,
                           preferred_element_type=jnp.float32)


def mc_head(feat, params, key, *, dropout_p, n_samples, num_tiles):
    n, k_in = feat.shape                       # (batch, 400)
    h1 = params["fc1_w"].shape[1]              # 120
    h2 = params["fc2_w"].shape[1]              # 84
    e = params["fc3_w"].shape[1]               # OUT_FEAT

    assert n_samples % num_tiles == 0
    tile_s = n_samples // num_tiles            # samples per grid tile
    tile_m = tile_s * n                        # GEMM rows per grid tile

    # One shared feature slab per tile (samples only differ through masks).
    feat_rep = jnp.broadcast_to(feat[None], (tile_s, n, k_in))
    feat_rep = feat_rep.reshape(tile_m, k_in).astype(jnp.float32)

    keep_p = 1.0 - dropout_p
    km1, km2, km3 = jax.random.split(key, 3)

    def masks(k, dim):
        keep = jax.random.bernoulli(k, keep_p, (num_tiles, tile_m, dim))
        return keep.astype(jnp.float32) * jnp.float32(1.0 / keep_p)

    m1 = masks(km1, k_in)
    m2 = masks(km2, h1)
    m3 = masks(km3, h2)

    # avg[b, r] = 1/n_samples iff row r of a tile belongs to batch element b
    # (rows are laid out sample-major: r = s_local * n + b).
    rows = jnp.arange(tile_m)
    avg = (rows[None, :] % n == jnp.arange(n)[:, None]).astype(jnp.float32)
    avg = avg * jnp.float32(1.0 / n_samples)

    w1 = params["fc1_w"].astype(jnp.float32)
    b1 = params["fc1_b"].reshape(1, h1).astype(jnp.float32)
    w2 = params["fc2_w"].astype(jnp.float32)
    b2 = params["fc2_b"].reshape(1, h2).astype(jnp.float32)
    w3 = params["fc3_w"].astype(jnp.float32)
    b3 = params["fc3_b"].reshape(1, e).astype(jnp.float32)

    def full(shape):                    # same (full) block for every tile
        return pl.BlockSpec(shape, lambda t, _s=shape: (0,) * len(_s))

    def per_tile(shape):                # leading tile axis, squeezed in-kernel
        return pl.BlockSpec((None,) + shape,
                            lambda t, _s=shape: (t,) + (0,) * len(_s))

    partial_means = pl.pallas_call(
        _mc_head_kernel,
        out_shape=jax.ShapeDtypeStruct((num_tiles, n, e), jnp.float32),
        grid=(num_tiles,),
        in_specs=[
            full((tile_m, k_in)),        # shared feature slab
            per_tile((tile_m, k_in)),    # dropout mask, layer 1
            per_tile((tile_m, h1)),      # dropout mask, layer 2
            per_tile((tile_m, h2)),      # dropout mask, layer 3
            full((k_in, h1)), full((1, h1)),
            full((h1, h2)), full((1, h2)),
            full((h2, e)), full((1, e)),
            full((n, tile_m)),           # averaging matrix
        ],
        out_specs=per_tile((n, e)),
        compiler_params=pltpu.CompilerParams(
            dimension_semantics=("parallel",)),   # shards tiles on v7x's 2 TCs
    )(feat_rep, m1, m2, m3, w1, b1, w2, b2, w3, b3, avg)

    # Tiny cross-tile reduction (num_tiles, N, E) -> (N, E), fused by XLA.
    return jnp.sum(partial_means, axis=0)


# ---------------------------------------------------------------------------
# Conv feature extractor: plain XLA (per perf review -- a Pallas im2col +
# maxpool chain is pure launch/HBM overhead at these shapes).
# ---------------------------------------------------------------------------
def _maxpool2x2(y):
    n, h, w, c = y.shape
    return jnp.max(y.reshape(n, h // 2, 2, w // 2, 2, c), axis=(2, 4))


def _lenet_features(x_nhwc, params):
    dn = ("NHWC", "HWIO", "NHWC")
    y = lax.conv_general_dilated(x_nhwc, params["conv1_w"], (1, 1), "VALID",
                                 dimension_numbers=dn)
    y = jnp.maximum(y + params["conv1_b"], 0.0)
    y = _maxpool2x2(y)                                      # (N, 14, 14, 6)
    y = lax.conv_general_dilated(y, params["conv2_w"], (1, 1), "VALID",
                                 dimension_numbers=dn)
    y = jnp.maximum(y + params["conv2_b"], 0.0)
    y = _maxpool2x2(y)                                      # (N, 5, 5, 16)
    # Flatten in PyTorch's NCHW order so fc1 weights stay import-compatible.
    return jnp.transpose(y, (0, 3, 1, 2)).reshape(y.shape[0], -1)   # (N, 400)


# ---------------------------------------------------------------------------
# Parameters / forward
# ---------------------------------------------------------------------------
def init_params(key):
    ks = jax.random.split(key, 10)

    def w(k, shape, scale):
        return (scale * jax.random.normal(k, shape)).astype(jnp.float32)

    # conv weights stored as (KH, KW, Cin, Cout); fc weights as (in, out)
    return dict(
        conv1_w=w(ks[0], (5, 5, 1, 6), 0.2),   conv1_b=w(ks[1], (6,), 0.1),
        conv2_w=w(ks[2], (5, 5, 6, 16), 0.1),  conv2_b=w(ks[3], (16,), 0.1),
        fc1_w=w(ks[4], (400, 120), 0.05),      fc1_b=w(ks[5], (120,), 0.05),
        fc2_w=w(ks[6], (120, 84), 0.1),        fc2_b=w(ks[7], (84,), 0.05),
        fc3_w=w(ks[8], (84, OUT_FEAT), 0.1),   fc3_b=w(ks[9], (OUT_FEAT,), 0.05),
    )


@functools.partial(jax.jit,
                   static_argnames=("training", "dropout_p", "mc_samples"))
def mcd_lenet_gate_forward(x_nchw, params, key, *, training=False,
                           dropout_p=DROPOUT_P, mc_samples=MC_SAMPLES):
    """Forward of MCDLeNetGate.

    training=True  -> softmax(gating_network(x)) with one dropout draw.
    training=False -> mc_predict: mean of softmax over `mc_samples` draws.
    Input x_nchw: (N, 1, 32, 32), NCHW like the PyTorch module.
    """
    x = jnp.transpose(x_nchw, (0, 2, 3, 1)).astype(jnp.float32)   # NHWC
    feat = _lenet_features(x, params)                             # (N, 400)

    n_samples = 1 if training else mc_samples
    num_tiles = 2 if (n_samples % 2 == 0 and n_samples >= 2) else 1
    return mc_head(feat, params, key, dropout_p=dropout_p,
                   n_samples=n_samples, num_tiles=num_tiles)


if __name__ == "__main__":
    key = jax.random.PRNGKey(0)
    k_x, k_p, k_d = jax.random.split(key, 3)
    x = jax.random.normal(k_x, (2, 1, 32, 32), dtype=jnp.float32)
    params = init_params(k_p)

    out = mcd_lenet_gate_forward(x, params, k_d, training=False)  # mc_predict
    out = jax.block_until_ready(out)

    assert out.shape == (2, OUT_FEAT), out.shape
    assert bool(jnp.all(jnp.isfinite(out)))
    row_sums = jnp.sum(out, axis=-1)
    assert bool(jnp.all(jnp.abs(row_sums - 1.0) < 1e-3)), row_sums
    print("KERNEL_OK")
</pallas_src>

<mosaic_0001>
module attributes {stable_mosaic.version = 11 : i64} {
  func.func @_mc_head_kernel(%arg0: i32, %arg1: memref<50x400xf32, #tpu.memory_space<vmem>>, %arg2: memref<1x50x400xf32, #tpu.memory_space<vmem>>, %arg3: memref<1x50x120xf32, #tpu.memory_space<vmem>>, %arg4: memref<1x50x84xf32, #tpu.memory_space<vmem>>, %arg5: memref<400x120xf32, #tpu.memory_space<vmem>>, %arg6: memref<1x120xf32, #tpu.memory_space<vmem>>, %arg7: memref<120x84xf32, #tpu.memory_space<vmem>>, %arg8: memref<1x84xf32, #tpu.memory_space<vmem>>, %arg9: memref<84x8xf32, #tpu.memory_space<vmem>>, %arg10: memref<1x8xf32, #tpu.memory_space<vmem>>, %arg11: memref<2x50xf32, #tpu.memory_space<vmem>>, %arg12: memref<1x2x8xf32, #tpu.memory_space<vmem>>) attributes {dimension_semantics = [#tpu.dimension_semantics<parallel>], iteration_bounds = array<i64: 2>, scalar_prefetch = 0 : i64, scratch_operands = 0 : i64, tpu.core_type = #tpu.core_type<tc>, window_params = [{pipeline_mode = #tpu.pipeline_mode<synchronous>, transform_indices = @transform_0, window_bounds = array<i64: 50, 400>}, {transform_indices = @transform_1, window_bounds = array<i64: 1, 50, 400>}, {transform_indices = @transform_2, window_bounds = array<i64: 1, 50, 120>}, {transform_indices = @transform_3, window_bounds = array<i64: 1, 50, 84>}, {pipeline_mode = #tpu.pipeline_mode<synchronous>, transform_indices = @transform_4, window_bounds = array<i64: 400, 120>}, {pipeline_mode = #tpu.pipeline_mode<synchronous>, transform_indices = @transform_5, window_bounds = array<i64: 1, 120>}, {pipeline_mode = #tpu.pipeline_mode<synchronous>, transform_indices = @transform_6, window_bounds = array<i64: 120, 84>}, {pipeline_mode = #tpu.pipeline_mode<synchronous>, transform_indices = @transform_7, window_bounds = array<i64: 1, 84>}, {pipeline_mode = #tpu.pipeline_mode<synchronous>, transform_indices = @transform_8, window_bounds = array<i64: 84, 8>}, {pipeline_mode = #tpu.pipeline_mode<synchronous>, transform_indices = @transform_9, window_bounds = array<i64: 1, 8>}, {pipeline_mode = #tpu.pipeline_mode<synchronous>, transform_indices = @transform_10, window_bounds = array<i64: 2, 50>}, {transform_indices = @transform_11, window_bounds = array<i64: 1, 2, 8>}]} {
    %c0 = arith.constant 0 : index
    %c0_0 = arith.constant 0 : index
    %0 = vector.load %arg1[%c0, %c0_0] : memref<50x400xf32, #tpu.memory_space<vmem>>, vector<50x400xf32>
    %c0_1 = arith.constant 0 : index
    %c0_2 = arith.constant 0 : index
    %c0_3 = arith.constant 0 : index
    %1 = vector.load %arg2[%c0_1, %c0_2, %c0_3] : memref<1x50x400xf32, #tpu.memory_space<vmem>>, vector<1x50x400xf32>
    %2 = vector.shape_cast %1 : vector<1x50x400xf32> to vector<50x400xf32>
    %3 = arith.mulf %0, %2 : vector<50x400xf32>
    %c0_4 = arith.constant 0 : index
    %c0_5 = arith.constant 0 : index
    %4 = vector.load %arg5[%c0_4, %c0_5] : memref<400x120xf32, #tpu.memory_space<vmem>>, vector<400x120xf32>
    %cst = arith.constant dense<0.000000e+00> : vector<50x120xf32>
    %5 = tpu.matmul %3, %4, %cst {dimension_numbers = #tpu.dot_dimension_numbers<[1], [0], [0], [1], [0, 0, 1, 1], [], []>} : vector<50x400xf32>, vector<400x120xf32>, vector<50x120xf32> -> vector<50x120xf32>
    %c0_6 = arith.constant 0 : index
    %c0_7 = arith.constant 0 : index
    %6 = vector.load %arg6[%c0_6, %c0_7] : memref<1x120xf32, #tpu.memory_space<vmem>>, vector<1x120xf32>
    %7 = vector.broadcast %6 : vector<1x120xf32> to vector<50x120xf32>
    %8 = arith.addf %5, %7 : vector<50x120xf32>
    %cst_8 = arith.constant 0.000000e+00 : f32
    %9 = vector.broadcast %cst_8 : f32 to vector<50x120xf32>
    %10 = arith.maximumf %8, %9 : vector<50x120xf32>
    %c0_9 = arith.constant 0 : index
    %c0_10 = arith.constant 0 : index
    %c0_11 = arith.constant 0 : index
    %11 = vector.load %arg3[%c0_9, %c0_10, %c0_11] : memref<1x50x120xf32, #tpu.memory_space<vmem>>, vector<1x50x120xf32>
    %12 = vector.shape_cast %11 : vector<1x50x120xf32> to vector<50x120xf32>
    %13 = arith.mulf %10, %12 : vector<50x120xf32>
    %c0_12 = arith.constant 0 : index
    %c0_13 = arith.constant 0 : index
    %14 = vector.load %arg7[%c0_12, %c0_13] : memref<120x84xf32, #tpu.memory_space<vmem>>, vector<120x84xf32>
    %cst_14 = arith.constant dense<0.000000e+00> : vector<50x84xf32>
    %15 = tpu.matmul %13, %14, %cst_14 {dimension_numbers = #tpu.dot_dimension_numbers<[1], [0], [0], [1], [0, 0, 1, 1], [], []>} : vector<50x120xf32>, vector<120x84xf32>, vector<50x84xf32> -> vector<50x84xf32>
    %c0_15 = arith.constant 0 : index
    %c0_16 = arith.constant 0 : index
    %16 = vector.load %arg8[%c0_15, %c0_16] : memref<1x84xf32, #tpu.memory_space<vmem>>, vector<1x84xf32>
    %17 = vector.broadcast %16 : vector<1x84xf32> to vector<50x84xf32>
    %18 = arith.addf %15, %17 : vector<50x84xf32>
    %cst_17 = arith.constant 0.000000e+00 : f32
    %19 = vector.broadcast %cst_17 : f32 to vector<50x84xf32>
    %20 = arith.maximumf %18, %19 : vector<50x84xf32>
    %c0_18 = arith.constant 0 : index
    %c0_19 = arith.constant 0 : index
    %c0_20 = arith.constant 0 : index
    %21 = vector.load %arg4[%c0_18, %c0_19, %c0_20] : memref<1x50x84xf32, #tpu.memory_space<vmem>>, vector<1x50x84xf32>
    %22 = vector.shape_cast %21 : vector<1x50x84xf32> to vector<50x84xf32>
    %23 = arith.mulf %20, %22 : vector<50x84xf32>
    %c0_21 = arith.constant 0 : index
    %c0_22 = arith.constant 0 : index
    %24 = vector.load %arg9[%c0_21, %c0_22] : memref<84x8xf32, #tpu.memory_space<vmem>>, vector<84x8xf32>
    %cst_23 = arith.constant dense<0.000000e+00> : vector<50x8xf32>
    %25 = tpu.matmul %23, %24, %cst_23 {dimension_numbers = #tpu.dot_dimension_numbers<[1], [0], [0], [1], [0, 0, 1, 1], [], []>} : vector<50x84xf32>, vector<84x8xf32>, vector<50x8xf32> -> vector<50x8xf32>
    %c0_24 = arith.constant 0 : index
    %c0_25 = arith.constant 0 : index
    %26 = vector.load %arg10[%c0_24, %c0_25] : memref<1x8xf32, #tpu.memory_space<vmem>>, vector<1x8xf32>
    %27 = vector.broadcast %26 : vector<1x8xf32> to vector<50x8xf32>
    %28 = arith.addf %25, %27 : vector<50x8xf32>
    %cst_26 = arith.constant dense<0xFF800000> : vector<50xf32>
    %29 = vector.multi_reduction <maximumf>, %28, %cst_26 [1] : vector<50x8xf32> to vector<50xf32>
    %30 = vector.shape_cast %29 : vector<50xf32> to vector<50x1xf32>
    %31 = vector.broadcast %30 : vector<50x1xf32> to vector<50x8xf32>
    %32 = arith.subf %28, %31 : vector<50x8xf32>
    %33 = math.exp %32 : vector<50x8xf32>
    %cst_27 = arith.constant dense<0.000000e+00> : vector<50xf32>
    %34 = vector.multi_reduction <add>, %33, %cst_27 [1] : vector<50x8xf32> to vector<50xf32>
    %35 = vector.shape_cast %34 : vector<50xf32> to vector<50x1xf32>
    %36 = vector.broadcast %35 : vector<50x1xf32> to vector<50x8xf32>
    %37 = arith.divf %33, %36 : vector<50x8xf32>
    %c0_28 = arith.constant 0 : index
    %c0_29 = arith.constant 0 : index
    %38 = vector.load %arg11[%c0_28, %c0_29] : memref<2x50xf32, #tpu.memory_space<vmem>>, vector<2x50xf32>
    %cst_30 = arith.constant dense<0.000000e+00> : vector<2x8xf32>
    %39 = tpu.matmul %38, %37, %cst_30 {dimension_numbers = #tpu.dot_dimension_numbers<[1], [0], [0], [1], [0, 0, 1, 1], [], []>} : vector<2x50xf32>, vector<50x8xf32>, vector<2x8xf32> -> vector<2x8xf32>
    %c0_31 = arith.constant 0 : index
    %c0_32 = arith.constant 0 : index
    %c0_33 = arith.constant 0 : index
    %40 = vector.load %arg12[%c0_31, %c0_32, %c0_33] : memref<1x2x8xf32, #tpu.memory_space<vmem>>, vector<1x2x8xf32>
    %41 = vector.shape_cast %40 : vector<1x2x8xf32> to vector<2x8xf32>
    %42 = vector.shape_cast %39 : vector<2x8xf32> to vector<1x2x8xf32>
    tpu.vector_store %arg12[%c0_31, %c0_32, %c0_33], %42 {strides = array<i32>} : memref<1x2x8xf32, #tpu.memory_space<vmem>>, vector<1x2x8xf32>,
    return
  }
  func.func @transform_0(%arg0: i32) -> (i32, i32) {
    %c0_i32 = arith.constant 0 : i32
    %c0_i32_0 = arith.constant 0 : i32
    %c0_i32_1 = arith.constant 0 : i32
    return %c0_i32, %c0_i32_0 : i32, i32
  }
  func.func @transform_1(%arg0: i32) -> (i32, i32, i32) {
    %c0_i32 = arith.constant 0 : i32
    %c0_i32_0 = arith.constant 0 : i32
    %c0_i32_1 = arith.constant 0 : i32
    return %arg0, %c0_i32, %c0_i32_0 : i32, i32, i32
  }
  func.func @transform_2(%arg0: i32) -> (i32, i32, i32) {
    %c0_i32 = arith.constant 0 : i32
    %c0_i32_0 = arith.constant 0 : i32
    %c0_i32_1 = arith.constant 0 : i32
    return %arg0, %c0_i32, %c0_i32_0 : i32, i32, i32
  }
  func.func @transform_3(%arg0: i32) -> (i32, i32, i32) {
    %c0_i32 = arith.constant 0 : i32
    %c0_i32_0 = arith.constant 0 : i32
    %c0_i32_1 = arith.constant 0 : i32
    return %arg0, %c0_i32, %c0_i32_0 : i32, i32, i32
  }
  func.func @transform_4(%arg0: i32) -> (i32, i32) {
    %c0_i32 = arith.constant 0 : i32
    %c0_i32_0 = arith.constant 0 : i32
    %c0_i32_1 = arith.constant 0 : i32
    return %c0_i32, %c0_i32_0 : i32, i32
  }
  func.func @transform_5(%arg0: i32) -> (i32, i32) {
    %c0_i32 = arith.constant 0 : i32
    %c0_i32_0 = arith.constant 0 : i32
    %c0_i32_1 = arith.constant 0 : i32
    return %c0_i32, %c0_i32_0 : i32, i32
  }
  func.func @transform_6(%arg0: i32) -> (i32, i32) {
    %c0_i32 = arith.constant 0 : i32
    %c0_i32_0 = arith.constant 0 : i32
    %c0_i32_1 = arith.constant 0 : i32
    return %c0_i32, %c0_i32_0 : i32, i32
  }
  func.func @transform_7(%arg0: i32) -> (i32, i32) {
    %c0_i32 = arith.constant 0 : i32
    %c0_i32_0 = arith.constant 0 : i32
    %c0_i32_1 = arith.constant 0 : i32
    return %c0_i32, %c0_i32_0 : i32, i32
  }
  func.func @transform_8(%arg0: i32) -> (i32, i32) {
    %c0_i32 = arith.constant 0 : i32
    %c0_i32_0 = arith.constant 0 : i32
    %c0_i32_1 = arith.constant 0 : i32
    return %c0_i32, %c0_i32_0 : i32, i32
  }
  func.func @transform_9(%arg0: i32) -> (i32, i32) {
    %c0_i32 = arith.constant 0 : i32
    %c0_i32_0 = arith.constant 0 : i32
    %c0_i32_1 = arith.constant 0 : i32
    return %c0_i32, %c0_i32_0 : i32, i32
  }
  func.func @transform_10(%arg0: i32) -> (i32, i32) {
    %c0_i32 = arith.constant 0 : i32
    %c0_i32_0 = arith.constant 0 : i32
    %c0_i32_1 = arith.constant 0 : i32
    return %c0_i32, %c0_i32_0 : i32, i32
  }
  func.func @transform_11(%arg0: i32) -> (i32, i32, i32) {
    %c0_i32 = arith.constant 0 : i32
    %c0_i32_0 = arith.constant 0 : i32
    %c0_i32_1 = arith.constant 0 : i32
    return %arg0, %c0_i32, %c0_i32_0 : i32, i32, i32
  }
}

</mosaic_0001>

<bundles_post_ra>
// kernel: mcd_lenet_gate_forward.1
= control target key start
LH: loop header
LB: loop body
LE: loop exit
PB: predicated region body
PF: predicated region fallthrough
CT: control target
= control target key end

     0   :  { %s1374_s17 = smov 0   ;;  %s1958_s0 = inlined_call_operand.vmem [shape: f32[50,400], index: 0, kind: input, shape index: {}]   ;;  %s1959_s1 = inlined_call_operand.vmem [shape: f32[2,50,400], index: 1, kind: input, shape index: {}]   ;;  %s1960_s2 = inlined_call_operand.vmem [shape: f32[2,50,120], index: 2, kind: input, shape index: {}]   ;;  %s1961_s3 = inlined_call_operand.vmem [shape: f32[2,50,84], index: 3, kind: input, shape index: {}]   ;;  %s1962_s4 = inlined_call_operand.vmem [shape: f32[400,120], index: 4, kind: input, shape index: {}]   ;;  %s1963_s5 = inlined_call_operand.vmem [shape: f32[1,120], index: 5, kind: input, shape index: {}]   ;;  %s1964_s6 = inlined_call_operand.vmem [shape: f32[120,84], index: 6, kind: input, shape index: {}]   ;;  %s1965_s7 = inlined_call_operand.vmem [shape: f32[1,84], index: 7, kind: input, shape index: {}]   ;;  %s1966_s8 = inlined_call_operand.vmem [shape: f32[84,8], index: 8, kind: input, shape index: {}]   ;;  %s1967_s9 = inlined_call_operand.vmem [shape: f32[1,8], index: 9, kind: input, shape index: {}]   ;;  %s1968_s10 = inlined_call_operand.vmem [shape: f32[2,50], index: 10, kind: input, shape index: {}]   ;;  %s1969_s11 = inlined_call_operand.vmem [shape: f32[2,2,8], index: 11, kind: output, shape index: {}]  }
   0x1 LB: > { %s1214_s18 = sadd.s32 4294967295, %s1312_s17   ;;  %p1218_p0 = scmp.ge.s32.totalorder %s1312_s17, 1  ;;  %s1312_s17 = sphi %s1374_s17, %s21_s17  }
   0x2   : > { %p357_p1 = scmp.lt.s32.totalorder %s1312_s17, 3 }
   0x4   : > { %p358_p2 = pnand %p1218_p0, %p357_p1 }
   0x5   : > { %p406_p3 = scmp.lt.s32.totalorder (!%p358_p2), %s1214_s18, 1 }
   0x6   : > { %361 = sbr.rel (%p358_p2) target bundleno = 941 (0x3ad), region = 64 }
   0xb   : > { %v524_v0 = vld [vmem:[%s1962_s4 + $0x78] sm:$0xff]  ;;  %v523_v2 = vld [vmem:[%s1962_s4 + $0x70] sm:$0xff]  ;;  %v522_v4 = vld [vmem:[%s1962_s4 + $0x68] sm:$0xff]  ;;  %s1981_s18 = smov (!%p406_p3, %s1214_s18), 1  ;;  %vm563_vm0 = vcmask 130048   ;;  %vm777_vm1 = vcmask 982016  }
   0xc   : > { %v540_v1 = vld [vmem:[%s1962_s4 + $0xf8] sm:$0xff]  ;;  %1249 = vmatpush.msra.mxu2 %v524_v0  ;;  %v539_v3 = vld [vmem:[%s1962_s4 + $0xf0] sm:$0xff]  ;;  %v538_v5 = vld [vmem:[%s1962_s4 + $0xe8] sm:$0xff]  ;;  %585 = vmatpush.msra.mxu0 %v524_v0  ;;  %s1265_s29 = smul.u32 224, %s1981_s18  ;;  %vm895_vm2 = vcmask 1043456   ;;  %vm873_vm3 = vcmask 687104  }
   0xd   : > { %623 = vmatpush.msra.mxu1 %v540_v1  ;;  %v521_v6 = vld [vmem:[%s1962_s4 + $0x60] sm:$0xff]  ;;  %v520_v8 = vld [vmem:[%s1962_s4 + $0x58] sm:$0xff]  ;;  %v519_v10 = vld [vmem:[%s1962_s4 + $0x50] sm:$0xff]  ;;  %vm937_vm4 = vcmask 64512   ;;  %vm956_vm5 = vcmask 58368   ;;  %vm1112_vm11 = vcmask 1041408  }
   0xe   : > { %1250 = vmatpush.msra.mxu2 %v523_v2  ;;  %v537_v7 = vld [vmem:[%s1962_s4 + $0xe0] sm:$0xff]  ;;  %586 = vmatpush.msra.mxu0 %v523_v2  ;;  %v536_v9 = vld [vmem:[%s1962_s4 + $0xd8] sm:$0xff]  ;;  %v535_v11 = vld [vmem:[%s1962_s4 + $0xd0] sm:$0xff]  ;;  %s1470_s23 = scalar_lea.vmem %s1959_s1, %s1265_s29  ;;  %s1266_s29 = smul.u32 56, %s1981_s18 }
   0xf   : > { %624 = vmatpush.msra.mxu1 %v539_v3  ;;  %v518_v12 = vld [vmem:[%s1962_s4 + $0x48] sm:$0xff]  ;;  %v517_v14 = vld [vmem:[%s1962_s4 + $0x40] sm:$0xff]  ;;  %v516_v16 = vld [vmem:[%s1962_s4 + $0x38] sm:$0xff]  ;;  %s1222_s13 = sshll.u32 %s1981_s18, 1 }
  0x10   : > { %1251 = vmatpush.msra.mxu2 %v522_v4  ;;  %587 = vmatpush.msra.mxu0 %v522_v4  ;;  %v534_v13 = vld [vmem:[%s1962_s4 + $0xc8] sm:$0xff]  ;;  %v533_v15 = vld [vmem:[%s1962_s4 + $0xc0] sm:$0xff]  ;;  %v532_v17 = vld [vmem:[%s1962_s4 + $0xb8] sm:$0xff]  ;;  %s1724_s14 = scalar_lea.vmem %s1960_s2, %s1266_s29  ;;  %s1789_s27 = scalar_lea.vmem %s1961_s3, %s1266_s29 }
  0x11   : > { %625 = vmatpush.msra.mxu1 %v538_v5  ;;  %v515_v18 = vld [vmem:[%s1962_s4 + $0x30] sm:$0xff]  ;;  %v514_v20 = vld [vmem:[%s1962_s4 + $0x28] sm:$0xff]  ;;  %v513_v22 = vld [vmem:[%s1962_s4 + $0x20] sm:$0xff]  ;;  %s424_s19 = scalar_lea.vmem %s1969_s11, %s1222_s13 }
  0x12   : > { %1252 = vmatpush.msra.mxu2 %v521_v6  ;;  %588 = vmatpush.msra.mxu0 %v521_v6  ;;  %v531_v19 = vld [vmem:[%s1962_s4 + $0xb0] sm:$0xff]  ;;  %v530_v21 = vld [vmem:[%s1962_s4 + $0xa8] sm:$0xff]  ;;  %v529_v23 = vld [vmem:[%s1962_s4 + $0xa0] sm:$0xff] }
  0x13   : > { %626 = vmatpush.msra.mxu1 %v537_v7  ;;  %v512_v24 = vld [vmem:[%s1962_s4 + $0x18] sm:$0xff]  ;;  %v511_v26 = vld [vmem:[%s1962_s4 + $0x10] sm:$0xff]  ;;  %v437_v28 = vld [vmem:[%s1958_s0 + $0x60] sm:$0xff] }
  0x14   : > { %1253 = vmatpush.msra.mxu2 %v520_v8  ;;  %589 = vmatpush.msra.mxu0 %v520_v8  ;;  %v528_v25 = vld [vmem:[%s1962_s4 + $0x98] sm:$0xff]  ;;  %v527_v27 = vld [vmem:[%s1962_s4 + $0x90] sm:$0xff]  ;;  %v465_v29 = vld [vmem:[%s1470_s23 + $0x60] sm:$0xff] }
  0x15   : > { %627 = vmatpush.msra.mxu1 %v536_v9  ;;  %v426_v30 = vld [vmem:[%s1958_s0 + $0x8] sm:$0xff]  ;;  %v509_v34 = vld [vmem:[%s1962_s4] sm:$0xff]  ;;  %v493_v36 = vmul.f32 %v465_v29, %v437_v28  ;;  %v556_v38 = vld [vmem:[%s1962_s4 + $0x178] sm:$0xff] }
  0x16   : > { %1254 = vmatpush.msra.mxu2 %v519_v10  ;;  %590 = vmatpush.msra.mxu0 %v519_v10  ;;  %v454_v31 = vld [vmem:[%s1470_s23 + $0x8] sm:$0xff]  ;;  %v525_v35 = vld [vmem:[%s1962_s4 + $0x80] sm:$0xff]  ;;  %v555_v39 = vld [vmem:[%s1962_s4 + $0x170] sm:$0xff] }
  0x17   : > { %628 = vmatpush.msra.mxu1 %v535_v11  ;;  %v510_v32 = vld [vmem:[%s1962_s4 + $0x8] sm:$0xff]  ;;  %v482_v37 = vmul.f32 %v454_v31, %v426_v30  ;;  %v425_v41 = vld [vmem:[%s1958_s0] sm:$0xff]  ;;  %v428_v43 = vld [vmem:[%s1958_s0 + $0x18] sm:$0xff] }
  0x18   : > { %1255 = vmatpush.msra.mxu2 %v518_v12  ;;  %591 = vmatpush.msra.mxu0 %v518_v12  ;;  %v526_v33 = vld [vmem:[%s1962_s4 + $0x88] sm:$0xff]  ;;  %v453_v42 = vld [vmem:[%s1470_s23] sm:$0xff]  ;;  %v456_v47 = vld [vmem:[%s1470_s23 + $0x18] sm:$0xff] }
  0x19   : > { %629 = vmatpush.msra.mxu1 %v534_v13  ;;  %v558_v40 = vld [vmem:[%s1962_s4 + $0x188] sm:$0xff]  ;;  %v441_v44 = vld [vmem:[%s1958_s0 + $0x80] sm:$0xff]  ;;  %v481_v46 = vmul.f32 %v453_v42, %v425_v41  ;;  %v484_v51 = vmul.f32 %v456_v47, %v428_v43  ;;  %v552_v56 = vld [vmem:[%s1962_s4 + $0x158] sm:$0xff] }
  0x1a   : > { %1256 = vmatpush.msra.mxu2 %v517_v14  ;;  %592 = vmatpush.msra.mxu0 %v517_v14  ;;  %v557_v45 = vld [vmem:[%s1962_s4 + $0x180] sm:$0xff]  ;;  %v430_v49 = vld [vmem:[%s1958_s0 + $0x28] sm:$0xff]  ;;  %v432_v59 = vld [vmem:[%s1958_s0 + $0x38] sm:$0xff] }
  0x1b   : > { %630 = vmatpush.msra.mxu1 %v533_v15  ;;  %v469_v48 = vld [vmem:[%s1470_s23 + $0x80] sm:$0xff]  ;;  %v458_v50 = vld [vmem:[%s1470_s23 + $0x28] sm:$0xff]  ;;  %713 = vmatpush.msra.mxu3 %v558_v40  ;;  %v551_v60 = vld [vmem:[%s1962_s4 + $0x150] sm:$0xff] }
  0x1c   : > { %1257 = vmatpush.msra.mxu2 %v516_v16  ;;  %593 = vmatpush.msra.mxu0 %v516_v16  ;;  %v554_v52 = vld [vmem:[%s1962_s4 + $0x168] sm:$0xff]  ;;  %v553_v53 = vld [vmem:[%s1962_s4 + $0x160] sm:$0xff]  ;;  %v497_v54 = vmul.f32 %v469_v48, %v441_v44  ;;  %v486_v55 = vmul.f32 %v458_v50, %v430_v49  ;;  %v460_v63 = vld [vmem:[%s1470_s23 + $0x38] sm:$0xff] }
  0x1d   : > { %631 = vmatpush.msra.mxu1 %v532_v17  ;;  %714 = vmatpush.msra.mxu3 %v557_v45  ;;  %v429_v57 = vld [vmem:[%s1958_s0 + $0x20] sm:$0xff]  ;;  %v434_v1 = vld [vmem:[%s1958_s0 + $0x48] sm:$0xff]  ;;  %v488_v3 = vmul.f32 %v460_v63, %v432_v59  ;;  %v548_v8 = vld [vmem:[%s1962_s4 + $0x138] sm:$0xff] }
  0x1e   : > { %1258 = vmatpush.msra.mxu2 %v515_v18  ;;  %594 = vmatpush.msra.mxu0 %v515_v18  ;;  %v457_v58 = vld [vmem:[%s1470_s23 + $0x20] sm:$0xff]  ;;  %v462_v2 = vld [vmem:[%s1470_s23 + $0x48] sm:$0xff]  ;;  %v436_v11 = vld [vmem:[%s1958_s0 + $0x58] sm:$0xff] }
  0x1f   : > { %632 = vmatpush.msra.mxu1 %v531_v19  ;;  %1223 = vmatmul.msk.f32.vlgmr.msra.gmra.mxu3 %vm563_vm0, %v484_v51  ;;  %v445_v61 = vld [vmem:[%s1958_s0 + $0xa0] sm:$0xff]  ;;  %v485_v62 = vmul.f32 %v457_v58, %v429_v57  ;;  %v550_v4 = vld [vmem:[%s1962_s4 + $0x148] sm:$0xff]  ;;  %v490_v7 = vmul.f32 %v462_v2, %v434_v1  ;;  %v547_v12 = vld [vmem:[%s1962_s4 + $0x130] sm:$0xff] }
  0x20   : > { %1259 = vmatpush.msra.mxu2 %v514_v20  ;;  %595 = vmatpush.msra.mxu0 %v514_v20  ;;  %v473_v0 = vld [vmem:[%s1470_s23 + $0xa0] sm:$0xff]  ;;  %v464_v15 = vld [vmem:[%s1470_s23 + $0x58] sm:$0xff]  ;;  %v438_v17 = vld [vmem:[%s1958_s0 + $0x68] sm:$0xff] }
  0x21   : > { %633 = vmatpush.msra.mxu1 %v530_v21  ;;  %v549_v5 = vld [vmem:[%s1962_s4 + $0x140] sm:$0xff]  ;;  %v501_v6 = vmul.f32 %v473_v0, %v445_v61  ;;  %v466_v18 = vld [vmem:[%s1470_s23 + $0x68] sm:$0xff]  ;;  %v492_v19 = vmul.f32 %v464_v15, %v436_v11  ;;  %v427_v31 = vld [vmem:[%s1958_s0 + $0x10] sm:$0xff] }
  0x22   : > { %1260 = vmatpush.msra.mxu2 %v513_v22  ;;  %596 = vmatpush.msra.mxu0 %v513_v22  ;;  %v433_v9 = vld [vmem:[%s1958_s0 + $0x40] sm:$0xff]  ;;  %v546_v20 = vld [vmem:[%s1962_s4 + $0x128] sm:$0xff]  ;;  %v431_v42 = vld [vmem:[%s1958_s0 + $0x30] sm:$0xff] }
  0x23   : > { %634 = vmatpush.msra.mxu1 %v529_v23  ;;  %v461_v10 = vld [vmem:[%s1470_s23 + $0x40] sm:$0xff]  ;;  %v494_v23 = vmul.f32 %v466_v18, %v438_v17  ;;  %v442_v28 = vld [vmem:[%s1958_s0 + $0x88] sm:$0xff]  ;;  %v459_v43 = vld [vmem:[%s1470_s23 + $0x30] sm:$0xff] }
  0x24   : > { %1261 = vmatpush.msra.mxu2 %v512_v24  ;;  %597 = vmatpush.msra.mxu0 %v512_v24  ;;  %v449_v13 = vld [vmem:[%s1958_s0 + $0xc0] sm:$0x3]  ;;  %v489_v14 = vmul.f32 %v461_v10, %v433_v9  ;;  %v544_v24 = vld [vmem:[%s1962_s4 + $0x118] sm:$0xff]  ;;  %v470_v30 = vld [vmem:[%s1470_s23 + $0x88] sm:$0xff]  ;;  %v487_v45 = vmul.f32 %v459_v43, %v431_v42 }
  0x25   : > { %635 = vmatpush.msra.mxu1 %v528_v25  ;;  %v477_v16 = vld [vmem:[%s1470_s23 + $0xc0] sm:$0x3]  ;;  %v440_v25 = vld [vmem:[%s1958_s0 + $0x78] sm:$0xff]  ;;  %v474_v41 = vld [vmem:[%s1470_s23 + $0xa8] sm:$0xff] }
  0x26   : > { %1262 = vmatpush.msra.mxu2 %v511_v26  ;;  %598 = vmatpush.msra.mxu0 %v511_v26  ;;  %v545_v21 = vld [vmem:[%s1962_s4 + $0x120] sm:$0xff]  ;;  %v505_v22 = vmul.f32 %v477_v16, %v449_v13  ;;  %v468_v26 = vld [vmem:[%s1470_s23 + $0x78] sm:$0xff]  ;;  %v450_v48 = vld [vmem:[%s1958_s0 + $0xc8] sm:$0x3] }
  0x27   : > { %636 = vmatpush.msra.mxu1 %v527_v27  ;;  %1224 = vmatmul.msk.f32.gmra.mxu3 %vm563_vm0, %v488_v3  ;;  %v543_v27 = vld [vmem:[%s1962_s4 + $0x110] sm:$0xff]  ;;  %v496_v29 = vmul.f32 %v468_v26, %v440_v25  ;;  %v476_v47 = vld [vmem:[%s1470_s23 + $0xb8] sm:$0xff]  ;;  %v478_v50 = vld [vmem:[%s1470_s23 + $0xc8] sm:$0x3] }
  0x28   : > { %1263 = vmatpush.msra.mxu2 %v510_v32  ;;  %599 = vmatpush.msra.mxu0 %v510_v32  ;;  %v455_v32 = vld [vmem:[%s1470_s23 + $0x10] sm:$0xff]  ;;  %v769_v9 = vld [vmem:[%s1964_s6 + $0x58] sm:$0xff]  ;;  %v767_v11 = vld [vmem:[%s1964_s6 + $0x48] sm:$0xff] }
  0x29   : > { %637 = vmatpush.msra.mxu1 %v526_v33  ;;  %v542_v33 = vld [vmem:[%s1962_s4 + $0x108] sm:$0xff]  ;;  %v435_v51 = vld [vmem:[%s1958_s0 + $0x50] sm:$0xff]  ;;  %v765_v13 = vld [vmem:[%s1964_s6 + $0x38] sm:$0xff] }
  0x2a   : > { %1264 = vmatpush.msra.mxu2 %v509_v34  ;;  %600 = vmatpush.msra.mxu0 %v509_v34  ;;  %v541_v34 = vld [vmem:[%s1962_s4 + $0x100] sm:$0xff]  ;;  %v439_v58 = vld [vmem:[%s1958_s0 + $0x70] sm:$0xff]  ;;  %v763_v15 = vld [vmem:[%s1964_s6 + $0x28] sm:$0xff] }
  0x2b   : > { %638 = vmatpush.msra.mxu1 %v525_v35  ;;  %610 = vmatmul.f32.vlgmr.msra.gmra.mxu2 %v493_v36  ;;  %v498_v35 = vmul.f32 %v470_v30, %v442_v28  ;;  %v483_v36 = vmul.f32 %v455_v32, %v427_v31  ;;  %v467_v59 = vld [vmem:[%s1470_s23 + $0x70] sm:$0xff]  ;;  %v762_v16 = vld [vmem:[%s1964_s6 + $0x20] sm:$0xff]  ;;  %v761_v18 = vld [vmem:[%s1964_s6 + $0x18] sm:$0xff] }
  0x2c   : > { %639 = vmatmul.f32.vlgmr.msra.gmra.mxu1 %v482_v37  ;;  %661 = vmatpush.msrb.mxu2 %v556_v38  ;;  %v444_v37 = vld [vmem:[%s1958_s0 + $0x98] sm:$0xff]  ;;  %v443_v61 = vld [vmem:[%s1958_s0 + $0x90] sm:$0xff] }
  0x2d   : > { %601 = vmatmul.f32.vlgmr.msra.gmra.mxu0 %v481_v46  ;;  %v472_v38 = vld [vmem:[%s1470_s23 + $0x98] sm:$0xff]  ;;  %v447_v0 = vld [vmem:[%s1958_s0 + $0xb0] sm:$0xff] }
  0x2e   : > { %662 = vmatpush.msrb.mxu2 %v555_v39  ;;  %v446_v39 = vld [vmem:[%s1958_s0 + $0xa8] sm:$0xff]  ;;  %v500_v40 = vmul.f32 %v472_v38, %v444_v37  ;;  %v448_v46 = vld [vmem:[%s1958_s0 + $0xb8] sm:$0xff]  ;;  %v475_v1 = vld [vmem:[%s1470_s23 + $0xb0] sm:$0xff] }
  0x2f   : > { %1225 = vmatmul.msk.f32.gmra.mxu3 %vm563_vm0, %v492_v19  ;;  %v502_v44 = vmul.f32 %v474_v41, %v446_v39  ;;  %v504_v49 = vmul.f32 %v476_v47, %v448_v46  ;;  %v503_v2 = vmul.f32 %v475_v1, %v447_v0  ;;  %v451_v3 = vld [vmem:[%s1958_s0 + $0xd0] sm:$0x3]  ;;  %v744_v39 = vld [vmem:[%s1724_s14] sm:$0xff] }
  0x30   : > { %663 = vmatpush.msrb.mxu2 %v554_v52  ;;  %v463_v52 = vld [vmem:[%s1470_s23 + $0x50] sm:$0xff] }
  0x31   : > { %v768_v10 = vld [vmem:[%s1964_s6 + $0x50] sm:$0xff] }
  0x32   : > { %664 = vmatpush.msrb.mxu2 %v553_v53  ;;  %v506_v53 = vmul.f32 %v478_v50, %v450_v48  ;;  %v760_v19 = vld [vmem:[%s1964_s6 + $0x10] sm:$0xff] }
  0x33   : > { %613 = vmatmul.f32.gmra.mxu2 %v497_v54  ;;  %v491_v54 = vmul.f32 %v463_v52, %v435_v51 }
  0x34   : > { %642 = vmatmul.f32.gmra.mxu1 %v486_v55  ;;  %665 = vmatpush.msrb.mxu2 %v552_v56  ;;  %v452_v55 = vld [vmem:[%s1958_s0 + $0xd8] sm:$0x3] }
  0x35   : > { %604 = vmatmul.f32.gmra.mxu0 %v485_v62  ;;  %v480_v56 = vld [vmem:[%s1470_s23 + $0xd8] sm:$0x3]  ;;  %v471_v62 = vld [vmem:[%s1470_s23 + $0x90] sm:$0xff] }
  0x36   : > { %666 = vmatpush.msrb.mxu2 %v551_v60  ;;  %v508_v57 = vmul.f32 %v480_v56, %v452_v55  ;;  %v495_v60 = vmul.f32 %v467_v59, %v439_v58  ;;  %v499_v63 = vmul.f32 %v471_v62, %v443_v61  ;;  %v746_v58 = vld [vmem:[%s1724_s14 + $0x10] sm:$0xff] }
  0x37   : > { %1226 = vmatmul.msk.f32.gmra.mxu3 %vm563_vm0, %v496_v29 }
  0x38   : > { %667 = vmatpush.msrb.mxu2 %v550_v4  ;;  %v479_v4 = vld [vmem:[%s1470_s23 + $0xd0] sm:$0x3] }
  0x3a   : > { %668 = vmatpush.msrb.mxu2 %v549_v5  ;;  %v507_v5 = vmul.f32 %v479_v4, %v451_v3  ;;  %v867_v3 = vld [vmem:[%s1966_s8 + $0x48] sm:$0xff] }
  0x3b   : > { %616 = vmatmul.f32.gmra.mxu2 %v501_v6  ;;  %v772_v6 = vld [vmem:[%s1964_s6 + $0x70] sm:$0xff] }
  0x3c   : > { %645 = vmatmul.f32.gmra.mxu1 %v490_v7  ;;  %669 = vmatpush.msrb.mxu2 %v548_v8  ;;  %v771_v7 = vld [vmem:[%s1964_s6 + $0x68] sm:$0xff]  ;;  %v770_v8 = vld [vmem:[%s1964_s6 + $0x60] sm:$0xff] }
  0x3d   : > { %607 = vmatmul.f32.gmra.mxu0 %v489_v14  ;;  %800 = vmatpush.msrb.mxu3 %v772_v6  ;;  %v764_v14 = vld [vmem:[%s1964_s6 + $0x30] sm:$0xff]  ;;  %v747_v6 = vld [vmem:[%s1724_s14 + $0x18] sm:$0xff] }
  0x3e   : > { %670 = vmatpush.msrb.mxu2 %v547_v12  ;;  %v766_v12 = vld [vmem:[%s1964_s6 + $0x40] sm:$0xff] }
  0x3f   : > { %1227 = vmatmul.msk.f32.gmra.mxu3 %vm563_vm0, %v500_v40 }
  0x40   : > { %671 = vmatpush.msrb.mxu2 %v546_v20  ;;  %801 = vmatpush.msrb.mxu3 %v771_v7  ;;  %v759_v20 = vld [vmem:[%s1964_s6 + $0x8] sm:$0xff] }
  0x42   : > { %672 = vmatpush.msrb.mxu2 %v545_v21  ;;  %802 = vmatpush.msrb.mxu3 %v770_v8  ;;  %v758_v21 = vld [vmem:[%s1964_s6] sm:$0xff] }
  0x43   : > { %619 = vmatmul.f32.gmra.mxu2 %v505_v22 }
  0x44   : > { %648 = vmatmul.f32.gmra.mxu1 %v494_v23  ;;  %673 = vmatpush.msrb.mxu2 %v544_v24 }
  0x45   : > { %803 = vmatpush.msrb.mxu3 %v769_v9 }
  0x46   : > { %674 = vmatpush.msrb.mxu2 %v543_v27  ;;  %v1713_v27 = vld [vmem:[%s1963_s5] ss:$0 sm:$0xff] }
  0x47   : > { %1228 = vmatmul.msk.f32.gmra.mxu3 %vm563_vm0, %v504_v49  ;;  %v745_v49 = vld [vmem:[%s1724_s14 + $0x8] sm:$0xff] }
  0x48   : > { %675 = vmatpush.msrb.mxu2 %v542_v33  ;;  %804 = vmatpush.msrb.mxu3 %v768_v10  ;;  %v865_v10 = vld [vmem:[%s1966_s8 + $0x38] sm:$0xff] }
  0x4a   : > { %676 = vmatpush.msrb.mxu2 %v541_v34  ;;  %805 = vmatpush.msrb.mxu3 %v767_v11 }
  0x4b   : > { %677 = vmatmul.f32.vlgmr.msrb.gmra.mxu2 %v483_v36 }
  0x4c   : > { %651 = vmatmul.f32.gmra.mxu1 %v498_v35  ;;  %806 = vmatpush.msrb.mxu3 %v766_v12 }
  0x4e   : > { %807 = vmatpush.msrb.mxu3 %v765_v13  ;;  %v864_v13 = vld [vmem:[%s1966_s8 + $0x30] sm:$0xff] }
  0x4f   : > { %1229 = vmatmul.msk.f32.gmra.mxu3 %vm563_vm0, %v508_v57 }
  0x50   : > { %808 = vmatpush.msrb.mxu3 %v764_v14 }
  0x52   : > { %809 = vmatpush.msrb.mxu3 %v763_v15 }
  0x53   : > { %680 = vmatmul.f32.gmra.mxu2 %v487_v45 }
  0x54   : > { %654 = vmatmul.f32.gmra.mxu1 %v502_v44  ;;  %810 = vmatpush.msrb.mxu3 %v762_v16  ;;  %v863_v16 = vld [vmem:[%s1966_s8 + $0x28] sm:$0xff] }
  0x56   : > { %811 = vmatpush.msrb.mxu3 %v761_v18 }
  0x58   : > { %812 = vmatpush.msrb.mxu3 %v760_v19  ;;  %v862_v19 = vld [vmem:[%s1966_s8 + $0x20] sm:$0xff] }
  0x5a   : > { %813 = vmatpush.msrb.mxu3 %v759_v20  ;;  %v748_v20 = vld [vmem:[%s1724_s14 + $0x20] sm:$0xff] }
  0x5b   : > { %683 = vmatmul.f32.gmra.mxu2 %v491_v54 }
  0x5c   : > { %657 = vmatmul.f32.gmra.mxu1 %v506_v53  ;;  %814 = vmatpush.msrb.mxu3 %v758_v21 }
  0x63   : > { %686 = vmatmul.f32.gmra.mxu2 %v495_v60 }
  0x6b   : > { %689 = vmatmul.f32.gmra.mxu2 %v499_v63 }
  0x73   : > { %692 = vmatmul.f32.gmra.mxu2 %v503_v2  ;;  %v868_v2 = vld [vmem:[%s1966_s8 + $0x50] sm:$0xf] }
  0x74   : > { %1237 = vmatpush.msk.msrb.mxu0 %vm895_vm2, %v868_v2 }
  0x76   : > { %905 = vmatpush.msrb.mxu0 %v867_v3 }
  0x7b   : > { %695 = vmatmul.f32.gmra.mxu2 %v507_v5  ;;  %v866_v5 = vld [vmem:[%s1966_s8 + $0x40] sm:$0xff] }
  0x7c   : > { %906 = vmatpush.msrb.mxu0 %v866_v5  ;;  %v848_v5 = vld [vmem:[%s1789_s27 + $0x20] sm:$0xff] }
  0x7e   : > { %907 = vmatpush.msrb.mxu0 %v865_v10  ;;  %v849_v10 = vld [vmem:[%s1789_s27 + $0x28] sm:$0xff] }
  0x80   : > { %908 = vmatpush.msrb.mxu0 %v864_v13 }
  0x82   : > { %909 = vmatpush.msrb.mxu0 %v863_v16 }
  0x84   : > { %910 = vmatpush.msrb.mxu0 %v862_v19 }
  0xa2   : > { %v716_v26 = vpop.f32.mrf.mxu3 }
  0xa9   : > { %v640_v23 = vpop.f32.mrf.mxu1 }
  0xaa   : > { %v602_v25 = vpop.f32.mrf.mxu0  ;;  %v719_v33 = vpop.f32.mrf.mxu3 }
  0xab   : > { %v603_v29 = vadd.f32 %v1713_v27, %v602_v25 }
  0xad   : > { %v641_v32 = vadd.f32 %v640_v23, %v603_v29 }
  0xae   : > { %v611_v17 = vpop.f32.mrf.mxu2 }
  0xaf   : > { %v612_v59 = vadd.f32 %v1713_v27, %v611_v17 }
  0xb1   : > { %v643_v30 = vpop.f32.mrf.mxu1 }
  0xb2   : > { %v605_v31 = vpop.f32.mrf.mxu0  ;;  %v722_v45 = vpop.f32.mrf.mxu3 }
  0xb3   : > { %v606_v36 = vadd.f32 %v1713_v27, %v605_v31 }
  0xb5   : > { %v644_v41 = vadd.f32 %v643_v30, %v606_v36 }
  0xb6   : > { %v614_v22 = vpop.f32.mrf.mxu2 }
  0xb7   : > { %v615_v8 = vadd.f32 %v1713_v27, %v614_v22 }
  0xb9   : > { %v646_v38 = vpop.f32.mrf.mxu1 }
  0xba   : > { %v608_v42 = vpop.f32.mrf.mxu0  ;;  %v725_v56 = vpop.f32.mrf.mxu3 }
  0xbb   : > { %v609_v47 = vadd.f32 %v1713_v27, %v608_v42 }
  0xbd   : > { %v647_v51 = vadd.f32 %v646_v38, %v609_v47 }
  0xbe   : > { %v1708_v24 = vpop.f32.mrf.mxu2 }
  0xbf   : > { %v618_v21 = vadd.f32 %v1713_v27, %v1708_v24 }
  0xc1   : > { %v649_v52 = vpop.f32.mrf.mxu1 }
  0xc2   : > { %v650_v61 = vadd.f32 %v649_v52, %v612_v59  ;;  %v728_v7 = vpop.f32.mrf.mxu3  ;;  %v846_v59 = vld [vmem:[%s1789_s27 + $0x10] sm:$0xff] }
  0xc6   : > { %v1715_v28 = vpop.f32.mrf.mxu2 }
  0xc9   : > { %v652_v63 = vpop.f32.mrf.mxu1 }
  0xca   : > { %v653_v11 = vadd.f32 %v652_v63, %v615_v8  ;;  %v731_v23 = vpop.f32.mrf.mxu3 }
  0xce   : > { %v678_v34 = vpop.f32.mrf.mxu2 }
  0xcf   : > { %v679_v35 = vadd.f32 %v678_v34, %v641_v32  ;;  %v621_v34 = vadd.f32 %v1713_v27, %v1715_v28  ;;  %v860_v27 = vld [vmem:[%s1966_s8 + $0x10] sm:$0xff]  ;;  %v859_v28 = vld [vmem:[%s1966_s8 + $0x8] sm:$0xff] }
  0xd1   : > { %v717_v37 = vadd.f32 %v716_v26, %v679_v35  ;;  %v655_v17 = vpop.f32.mrf.mxu1 }
  0xd2   : > { %v656_v25 = vadd.f32 %v655_v17, %v618_v21  ;;  %v734_v38 = vpop.f32.mrf.mxu3 }
  0xd3   : > { %v737_v40 = vmax.f32 %v717_v37, 0.0 }
  0xd5   : > { %v751_v43 = vmul.f32 %v744_v39, %v737_v40 }
  0xd6   : > { %v681_v44 = vpop.f32.mrf.mxu2 }
  0xd7   : > { %v682_v46 = vadd.f32 %v681_v44, %v644_v41  ;;  %1230 = vmatmul.msk.f32.vlgmr.msrb.gmra.mxu3 %vm777_vm1, %v751_v43  ;;  %v750_v41 = vld [vmem:[%s1724_s14 + $0x30] sm:$0x3]  ;;  %v861_v44 = vld [vmem:[%s1966_s8 + $0x18] sm:$0xff] }
  0xd8   : > { %911 = vmatpush.msrb.mxu0 %v861_v44 }
  0xd9   : > { %v720_v48 = vadd.f32 %v719_v33, %v682_v46  ;;  %v658_v32 = vpop.f32.mrf.mxu1  ;;  %v749_v33 = vld [vmem:[%s1724_s14 + $0x28] sm:$0xff]  ;;  %v1276_v46 = vld [vmem:[%s1965_s7] ss:$0 sm:$0xff] }
  0xda   : > { %v659_v36 = vadd.f32 %v658_v32, %v621_v34  ;;  %912 = vmatpush.msrb.mxu0 %v860_v27 }
  0xdb   : > { %v738_v50 = vmax.f32 %v720_v48, 0.0 }
  0xdc   : > { %913 = vmatpush.msrb.mxu0 %v859_v28 }
  0xdd   : > { %v752_v53 = vmul.f32 %v745_v49, %v738_v50  ;;  %v844_v49 = vld [vmem:[%s1789_s27] sm:$0xff] }
  0xde   : > { %v684_v54 = vpop.f32.mrf.mxu2 }
  0xdf   : > { %v685_v55 = vadd.f32 %v684_v54, %v647_v51  ;;  %1231 = vmatmul.msk.f32.gmra.mxu3 %vm777_vm1, %v752_v53  ;;  %v845_v54 = vld [vmem:[%s1789_s27 + $0x8] sm:$0xff] }
  0xe1   : > { %v723_v57 = vadd.f32 %v722_v45, %v685_v55  ;;  %v858_v45 = vld [vmem:[%s1966_s8] sm:$0xff] }
  0xe2   : > { %914 = vmatpush.msrb.mxu0 %v858_v45 }
  0xe3   : > { %v739_v60 = vmax.f32 %v723_v57, 0.0 }
  0xe5   : > { %v753_v62 = vmul.f32 %v746_v58, %v739_v60 }
  0xe6   : > { %v687_v0 = vpop.f32.mrf.mxu2 }
  0xe7   : > { %v688_v1 = vadd.f32 %v687_v0, %v650_v61  ;;  %1232 = vmatmul.msk.f32.gmra.mxu3 %vm777_vm1, %v753_v62  ;;  %v847_v0 = vld [vmem:[%s1789_s27 + $0x18] sm:$0xff] }
  0xe9   : > { %v726_v4 = vadd.f32 %v725_v56, %v688_v1 }
  0xeb   : > { %v740_v9 = vmax.f32 %v726_v4, 0.0 }
  0xed   : > { %v754_v12 = vmul.f32 %v747_v6, %v740_v9 }
  0xee   : > { %v690_v14 = vpop.f32.mrf.mxu2 }
  0xef   : > { %v691_v15 = vadd.f32 %v690_v14, %v653_v11  ;;  %1233 = vmatmul.msk.f32.gmra.mxu3 %vm777_vm1, %v754_v12 }
  0xf1   : > { %v729_v18 = vadd.f32 %v728_v7, %v691_v15  ;;  %v850_v15 = vld [vmem:[%s1789_s27 + $0x30] sm:$0x3] }
  0xf3   : > { %v741_v22 = vmax.f32 %v729_v18, 0.0 }
  0xf5   : > { %v755_v26 = vmul.f32 %v748_v20, %v741_v22  ;;  %v1277_v20 = vld [vmem:[%s1967_s9] ss:$0 sm:$0xff] }
  0xf6   : > { %v693_v29 = vpop.f32.mrf.mxu2 }
  0xf7   : > { %v694_v30 = vadd.f32 %v693_v29, %v656_v25  ;;  %1234 = vmatmul.msk.f32.gmra.mxu3 %vm777_vm1, %v755_v26 }
  0xf9   : > { %v732_v31 = vadd.f32 %v731_v23, %v694_v30 }
  0xfb   : > { %v742_v35 = vmax.f32 %v732_v31, 0.0 }
  0xfd   : > { %v756_v37 = vmul.f32 %v749_v33, %v742_v35 }
  0xfe   : > { %v696_v24 = vpop.f32.mrf.mxu2 }
  0xff   : > { %v697_v39 = vadd.f32 %v696_v24, %v659_v36  ;;  %1235 = vmatmul.msk.f32.gmra.mxu3 %vm777_vm1, %v756_v37 }
 0x101   : > { %v735_v40 = vadd.f32 %v734_v38, %v697_v39 }
 0x103   : > { %v743_v42 = vmax.f32 %v735_v40, 0.0 }
 0x105   : > { %v757_v43 = vmul.f32 %v750_v41, %v743_v42 }
 0x107   : > { %1236 = vmatmul.msk.f32.gmra.mxu3 %vm777_vm1, %v757_v43 }
 0x15a   : > { %v816_v47 = vpop.f32.mrf.mxu3 }
 0x15b   : > { %v817_v48 = vadd.f32 %v1276_v46, %v816_v47 }
 0x15d   : > { %v837_v50 = vmax.f32 %v817_v48, 0.0 }
 0x15f   : > { %v851_v51 = vmul.f32 %v844_v49, %v837_v50 }
 0x161   : > { %1238 = vmatmul.msk.f32.vlgmr.msrb.gmra.mxu0 %vm873_vm3, %v851_v51 }
 0x162   : > { %v819_v52 = vpop.f32.mrf.mxu3 }
 0x163   : > { %v820_v53 = vadd.f32 %v1276_v46, %v819_v52 }
 0x165   : > { %v838_v55 = vmax.f32 %v820_v53, 0.0 }
 0x167   : > { %v852_v56 = vmul.f32 %v845_v54, %v838_v55 }
 0x169   : > { %1239 = vmatmul.msk.f32.gmra.mxu0 %vm873_vm3, %v852_v56 }
 0x16a   : > { %v822_v57 = vpop.f32.mrf.mxu3 }
 0x16b   : > { %v823_v58 = vadd.f32 %v1276_v46, %v822_v57 }
 0x16d   : > { %v839_v60 = vmax.f32 %v823_v58, 0.0 }
 0x16f   : > { %v853_v61 = vmul.f32 %v846_v59, %v839_v60 }
 0x171   : > { %1240 = vmatmul.msk.f32.gmra.mxu0 %vm873_vm3, %v853_v61 }
 0x172   : > { %v825_v62 = vpop.f32.mrf.mxu3 }
 0x173   : > { %v826_v63 = vadd.f32 %v1276_v46, %v825_v62 }
 0x175   : > { %v840_v1 = vmax.f32 %v826_v63, 0.0 }
 0x177   : > { %v854_v2 = vmul.f32 %v847_v0, %v840_v1 }
 0x179   : > { %1241 = vmatmul.msk.f32.gmra.mxu0 %vm873_vm3, %v854_v2 }
 0x17a   : > { %v828_v3 = vpop.f32.mrf.mxu3 }
 0x17b   : > { %v829_v4 = vadd.f32 %v1276_v46, %v828_v3 }
 0x17d   : > { %v841_v6 = vmax.f32 %v829_v4, 0.0 }
 0x17f   : > { %v855_v7 = vmul.f32 %v848_v5, %v841_v6 }
 0x181   : > { %1242 = vmatmul.msk.f32.gmra.mxu0 %vm873_vm3, %v855_v7 }
 0x182   : > { %v831_v8 = vpop.f32.mrf.mxu3 }
 0x183   : > { %v832_v9 = vadd.f32 %v1276_v46, %v831_v8 }
 0x185   : > { %v842_v11 = vmax.f32 %v832_v9, 0.0 }
 0x187   : > { %v856_v12 = vmul.f32 %v849_v10, %v842_v11 }
 0x189   : > { %1243 = vmatmul.msk.f32.gmra.mxu0 %vm873_vm3, %v856_v12 }
 0x18a   : > { %v834_v13 = vpop.f32.mrf.mxu3 }
 0x18b   : > { %v835_v14 = vadd.f32 %v1276_v46, %v834_v13 }
 0x18d   : > { %v843_v16 = vmax.f32 %v835_v14, 0.0 }
 0x18f   : > { %v857_v17 = vmul.f32 %v850_v15, %v843_v16 }
 0x191   : > { %1244 = vmatmul.msk.f32.gmra.mxu0 %vm873_vm3, %v857_v17 }
 0x1de   : > { %v916_v18 = vpop.f32.mrf.mxu0 }
 0x1df   : > { %v917_v40 = vadd.f32 %v1277_v20, %v916_v18 }
 0x1e1   : > { %v938_v41 = vsel %vm937_vm4, %v917_v40, -inf }
 0x1e6   : > { %v919_v19 = vpop.f32.mrf.mxu0 }
 0x1e7   : > { %v920_v25 = vadd.f32 %v1277_v20, %v919_v19 }
 0x1e9   : > { %v941_v29 = vsel %vm937_vm4, %v920_v25, -inf }
 0x1ee   : > { %v922_v21 = vpop.f32.mrf.mxu0 }
 0x1ef   : > { %v923_v22 = vadd.f32 %v1277_v20, %v922_v21 }
 0x1f1   : > { %v944_v23 = vsel %vm937_vm4, %v923_v22, -inf }
 0x1f2   : > { %945 = vmax.xlane.f32.xlu2 %v944_v23 }
 0x1f6   : > { %v925_v26 = vpop.f32.mrf.mxu0 }
 0x1f7   : > { %v926_v33 = vadd.f32 %v1277_v20, %v925_v26 }
 0x1f9   : > { %v947_v35 = vsel %vm937_vm4, %v926_v33, -inf }
 0x1fa   : > { %942 = vmax.xlane.f32.xlu2 %v941_v29 }
 0x1fe   : > { %v928_v30 = vpop.f32.mrf.mxu0 }
 0x1ff   : > { %v929_v31 = vadd.f32 %v1277_v20, %v928_v30 }
 0x201   : > { %v950_v32 = vsel %vm937_vm4, %v929_v31, -inf }
 0x202   : > { %951 = vmax.xlane.f32.xlu1 %v950_v32 }
 0x206   : > { %v931_v34 = vpop.f32.mrf.mxu0 }
 0x207   : > { %v932_v38 = vadd.f32 %v1277_v20, %v931_v34 }
 0x209   : > { %v953_v39 = vsel %vm937_vm4, %v932_v38, -inf }
 0x20a   : > { %948 = vmax.xlane.f32.xlu1 %v947_v35 }
 0x20e   : > { %v934_v36 = vpop.f32.mrf.mxu0 }
 0x20f   : > { %v935_v37 = vadd.f32 %v1277_v20, %v934_v36 }
 0x211   : > { %v957_v24 = vsel %vm956_vm5, %v935_v37, -inf }
 0x212   : > { %958 = vmax.xlane.f32.xlu0 %v957_v24 }
 0x21a   : > { %954 = vmax.xlane.f32.xlu0 %v953_v39 }
 0x222   : > { %939 = vmax.xlane.f32.xlu0 %v938_v41 }
 0x265   : > { %v946_v42 = vpop.xlane.xlu2 %945 }
 0x266   : > { %v962_v60 = vsub.f32 %v923_v22, %v946_v42 }
 0x268   : > { %v971_v63 = vmul.f32 1.442695, %v962_v60 }
 0x26d   : > { %v943_v43 = vpop.xlane.xlu2 %942 }
 0x26e   : > { %v961_v28 = vsub.f32 %v920_v25, %v943_v43 }
 0x270   : > { %v969_v46 = vmul.f32 1.442695, %v961_v28 }
 0x275   : > { %v952_v44 = vpop.xlane.xlu1 %951 }
 0x276   : > { %v964_v27 = vsub.f32 %v929_v31, %v952_v44 }
 0x278   : > { %v975_v45 = vmul.f32 1.442695, %v964_v27 }
 0x27a   : > { %1278 = vpow2.f32 %v975_v45 }
 0x27b   : > { %1280 = vpow2.f32 %v969_v46 }
 0x27d   : > { %v949_v49 = vpop.xlane.xlu1 %948 }
 0x27e   : > { %v963_v53 = vsub.f32 %v926_v33, %v949_v49 }
 0x280   : > { %v1815_v47 = vpop.eup %1278  ;;  %v973_v56 = vmul.f32 1.442695, %v963_v53 }
 0x281   : > { %v993_v48 = vsel %vm937_vm4, %v1815_v47, 0.0  ;;  %v1819_v51 = vpop.eup %1280 }
 0x282   : > { %994 = vadd.xlane.f32.xlu0 %v993_v48  ;;  %v984_v55 = vsel %vm937_vm4, %v1819_v51, 0.0 }
 0x285   : > { %v959_v50 = vpop.xlane.xlu0 %958 }
 0x286   : > { %v966_v52 = vsub.f32 %v935_v37, %v959_v50 }
 0x288   : > { %v979_v54 = vmul.f32 1.442695, %v966_v52 }
 0x28a   : > { %1282 = vpow2.f32 %v979_v54  ;;  %985 = vadd.xlane.f32.xlu0 %v984_v55 }
 0x28b   : > { %1284 = vpow2.f32 %v973_v56 }
 0x28d   : > { %v955_v57 = vpop.xlane.xlu0 %954 }
 0x28e   : > { %v965_v58 = vsub.f32 %v932_v38, %v955_v57 }
 0x290   : > { %v1823_v59 = vpop.eup %1282  ;;  %v977_v61 = vmul.f32 1.442695, %v965_v58 }
 0x291   : > { %v999_v62 = vsel %vm956_vm5, %v1823_v59, 0.0  ;;  %v1827_v1 = vpop.eup %1284 }
 0x292   : > { %1286 = vpow2.f32 %v977_v61  ;;  %1000 = vadd.xlane.f32.xlu1 %v999_v62  ;;  %v990_v5 = vsel %vm937_vm4, %v1827_v1, 0.0 }
 0x293   : > { %1288 = vpow2.f32 %v971_v63 }
 0x295   : > { %v940_v0 = vpop.xlane.xlu0 %939 }
 0x296   : > { %v960_v2 = vsub.f32 %v917_v40, %v940_v0 }
 0x298   : > { %v1829_v3 = vpop.eup %1286  ;;  %v967_v4 = vmul.f32 1.442695, %v960_v2 }
 0x299   : > { %v996_v6 = vsel %vm937_vm4, %v1829_v3, 0.0  ;;  %v1835_v7 = vpop.eup %1288 }
 0x29a   : > { %1290 = vpow2.f32 %v967_v4  ;;  %991 = vadd.xlane.f32.xlu1 %v990_v5  ;;  %997 = vadd.xlane.f32.xlu2 %v996_v6  ;;  %v987_v9 = vsel %vm937_vm4, %v1835_v7, 0.0 }
 0x2a0   : > { %v1837_v8 = vpop.eup %1290 }
 0x2a1   : > { %v981_v10 = vsel %vm937_vm4, %v1837_v8, 0.0 }
 0x2a2   : > { %988 = vadd.xlane.f32.xlu2 %v987_v9  ;;  %982 = vadd.xlane.f32.xlu1 %v981_v10 }
 0x2f5   : > { %v995_v11 = vpop.xlane.xlu0 %994 }
 0x2f6   : > { %1292 = vrcp.f32 %v995_v11  ;;  %v1071_v23 = vand.u32 2147483647, %v995_v11  ;;  %v1073_v25 = vand.u32 2147483648, %v995_v11  ;;  %vm1067_vm9 = vweird.f32 %v995_v11 }
 0x2f8   : > { %vm1866_vm10 = vcmp.eq.f32.partialorder %v1071_v23, 8.507059e+37  ;;  %v1074_v37 = vor.u32 1.1754944e-38, %v1073_v25 }
 0x2fc   : > { %v1843_v13 = vpop.eup %1292 }
 0x2fd   : > { %v1845_v14 = vpop.xlane.xlu0 %985  ;;  %v1063_v15 = vmul.f32 %v1843_v13, %v995_v11  ;;  %vm1068_vm12 = vweird.f32 %v1843_v13 }
 0x2fe   : > { %v1028_v45 = vand.u32 2147483648, %v1845_v14  ;;  %v1026_v49 = vand.u32 2147483647, %v1845_v14  ;;  %vm1022_vm14 = vweird.f32 %v1845_v14  ;;  %vm1892_vm15 = vmor %vm1067_vm9, %vm1068_vm12 }
 0x2ff   : > { %v1064_v20 = vsub.f32 1.0, %v1063_v15 }
 0x300   : > { %v1029_v62 = vor.u32 1.1754944e-38, %v1028_v45 }
 0x301   : > { %v1065_v29 = vmul.f32 %v1843_v13, %v1064_v20 }
 0x303   : > { %v1066_v44 = vadd.f32 %v1843_v13, %v1065_v29 }
 0x305   : > { %v1001_v12 = vpop.xlane.xlu1 %1000  ;;  %v1070_v57 = vsel %vm1892_vm15, %v1843_v13, %v1066_v44 }
 0x306   : > { %1294 = vrcp.f32 %v1001_v12  ;;  %v1103_v30 = vand.u32 2147483648, %v1001_v12  ;;  %vm1097_vm7 = vweird.f32 %v1001_v12  ;;  %v1101_v33 = vand.u32 2147483647, %v1001_v12 }
 0x307   : > { %1296 = vrcp.f32 %v1845_v14  ;;  %v1075_v9 = vsel %vm1866_vm10, %v1074_v37, %v1070_v57 }
 0x308   : > { %v1104_v42 = vor.u32 1.1754944e-38, %v1103_v30  ;;  %vm1102_vm13 = vcmp.eq.f32.partialorder %v1101_v33, 8.507059e+37 }
 0x30c   : > { %v1295_v16 = vpop.eup %1294 }
 0x30d   : > { %v1093_v17 = vmul.f32 %v1295_v16, %v1001_v12  ;;  %v1849_v18 = vpop.xlane.xlu1 %991  ;;  %v1851_v19 = vpop.xlane.xlu2 %997  ;;  %vm1098_vm6 = vweird.f32 %v1295_v16 }
 0x30e   : > { %1298 = vrcp.f32 %v1849_v18  ;;  %v1855_v22 = vpop.eup %1296  ;;  %vm1862_vm8 = vmor %vm1097_vm7, %vm1098_vm6  ;;  %v1088_v53 = vand.u32 2147483648, %v1851_v19  ;;  %v1086_v56 = vand.u32 2147483647, %v1851_v19  ;;  %vm1052_vm2 = vweird.f32 %v1849_v18 }
 0x30f   : > { %v1094_v21 = vsub.f32 1.0, %v1093_v17  ;;  %1300 = vrcp.f32 %v1851_v19  ;;  %v1018_v31 = vmul.f32 %v1855_v22, %v1845_v14  ;;  %v1058_v60 = vand.u32 2147483648, %v1849_v18  ;;  %v1107_v14 = vld [vmem:[%s1968_s10] sm:$0x3] }
 0x310   : > { %vm1082_vm3 = vweird.f32 %v1851_v19  ;;  %v1056_v2 = vand.u32 2147483647, %v1849_v18  ;;  %vm1023_vm6 = vweird.f32 %v1855_v22  ;;  %v1089_v6 = vor.u32 1.1754944e-38, %v1088_v53 }
 0x311   : > { %v1095_v26 = vmul.f32 %v1295_v16, %v1094_v21  ;;  %v1019_v27 = vsub.f32 1.0, %v1018_v31 }
 0x312   : > { %vm1057_vm9 = vcmp.eq.f32.partialorder %v1056_v2, 8.507059e+37 }
 0x313   : > { %v1096_v32 = vadd.f32 %v1295_v16, %v1095_v26  ;;  %v1020_v58 = vmul.f32 %v1855_v22, %v1019_v27 }
 0x314   : > { %v1860_v34 = vpop.eup %1298 }
 0x315   : > { %v1301_v24 = vpop.eup %1300  ;;  %v1048_v38 = vmul.f32 %v1860_v34, %v1849_v18  ;;  %v1872_v39 = vpop.xlane.xlu2 %988  ;;  %v1100_v41 = vsel %vm1862_vm8, %v1295_v16, %v1096_v32  ;;  %vm1053_vm0 = vweird.f32 %v1860_v34  ;;  %vm1087_vm8 = vcmp.eq.f32.partialorder %v1086_v56, 8.507059e+37 }
 0x316   : > { %v1874_v40 = vpop.xlane.xlu1 %982  ;;  %v1078_v43 = vmul.f32 %v1301_v24, %v1851_v19  ;;  %1302 = vrcp.f32 %v1872_v39  ;;  %v1105_v48 = vsel %vm1102_vm13, %v1104_v42, %v1100_v41  ;;  %vm1083_vm1 = vweird.f32 %v1301_v24  ;;  %vm1907_vm4 = vmor %vm1052_vm2, %vm1053_vm0 }
 0x317   : > { %v1049_v28 = vsub.f32 1.0, %v1048_v38  ;;  %1304 = vrcp.f32 %v1874_v40  ;;  %v1106_v52 = vmul.f32 %v1823_v59, %v1105_v48  ;;  %vm1084_vm7 = vmor %vm1082_vm3, %vm1083_vm1  ;;  %v1059_v16 = vor.u32 1.1754944e-38, %v1058_v60 }
 0x318   : > { %v1079_v46 = vsub.f32 1.0, %v1078_v43  ;;  %v1021_v17 = vadd.f32 %v1855_v22, %v1020_v58  ;;  %v1043_v18 = vand.u32 2147483648, %v1872_v39  ;;  %v1041_v25 = vand.u32 2147483647, %v1872_v39 }
 0x319   : > { %v1050_v50 = vmul.f32 %v1860_v34, %v1049_v28  ;;  %1245 = vmatpush.msk.msrb.mxu1 %vm1112_vm11, %v1106_v52  ;;  %vm1929_vm11 = vmor %vm1022_vm14, %vm1023_vm6  ;;  %v1013_v30 = vand.u32 2147483648, %v1874_v40  ;;  %vm1037_vm13 = vweird.f32 %v1872_v39  ;;  %v1011_v33 = vand.u32 2147483647, %v1874_v40 }
 0x31a   : > { %v1080_v55 = vmul.f32 %v1301_v24, %v1079_v46  ;;  %v1025_v32 = vsel %vm1929_vm11, %v1855_v22, %v1021_v17  ;;  %vm1007_vm15 = vweird.f32 %v1874_v40  ;;  %vm1042_vm1 = vcmp.eq.f32.partialorder %v1041_v25, 8.507059e+37 }
 0x31b   : > { %v1051_v59 = vadd.f32 %v1860_v34, %v1050_v50  ;;  %vm1027_vm2 = vcmp.eq.f32.partialorder %v1026_v49, 8.507059e+37  ;;  %vm1012_vm3 = vcmp.eq.f32.partialorder %v1011_v33, 8.507059e+37 }
 0x31c   : > { %v1303_v61 = vpop.eup %1302  ;;  %v1081_v63 = vadd.f32 %v1301_v24, %v1080_v55 }
 0x31d   : > { %v1305_v4 = vpop.eup %1304  ;;  %v1033_v5 = vmul.f32 %v1303_v61, %v1872_v39  ;;  %v1055_v12 = vsel %vm1907_vm4, %v1860_v34, %v1051_v59  ;;  %vm1038_vm10 = vweird.f32 %v1303_v61  ;;  %v1044_v34 = vor.u32 1.1754944e-38, %v1043_v18 }
 0x31e   : > { %v1003_v10 = vmul.f32 %v1305_v4, %v1874_v40  ;;  %v1085_v11 = vsel %vm1084_vm7, %v1301_v24, %v1081_v63  ;;  %v1060_v23 = vsel %vm1057_vm9, %v1059_v16, %v1055_v12  ;;  %vm1008_vm12 = vweird.f32 %v1305_v4  ;;  %vm1039_vm14 = vmor %vm1037_vm13, %vm1038_vm10 }
 0x31f   : > { %v1034_v13 = vsub.f32 1.0, %v1033_v5  ;;  %v1090_v15 = vsel %vm1087_vm8, %v1089_v6, %v1085_v11  ;;  %v1061_v35 = vmul.f32 %v1827_v1, %v1060_v23  ;;  %vm1009_vm0 = vmor %vm1007_vm15, %vm1008_vm12  ;;  %v1030_v24 = vsel %vm1027_vm2, %v1029_v62, %v1025_v32 }
 0x320   : > { %v1004_v19 = vsub.f32 1.0, %v1003_v10  ;;  %v1091_v20 = vmul.f32 %v1829_v3, %v1090_v15  ;;  %v1076_v3 = vmul.f32 %v1815_v47, %v1075_v9  ;;  %v1014_v47 = vor.u32 1.1754944e-38, %v1013_v30 }
 0x321   : > { %v1035_v21 = vmul.f32 %v1303_v61, %v1034_v13  ;;  %v1031_v1 = vmul.f32 %v1819_v51, %v1030_v24  ;;  %vm1108_vm4 = vcmask 408576  }
 0x322   : > { %v1005_v29 = vmul.f32 %v1305_v4, %v1004_v19  ;;  %1126 = vmatpush.msrb.mxu1 %v1091_v20 }
 0x323   : > { %v1036_v31 = vadd.f32 %v1303_v61, %v1035_v21 }
 0x324   : > { %1127 = vmatpush.msrb.mxu1 %v1076_v3  ;;  %v1006_v36 = vadd.f32 %v1305_v4, %v1005_v29 }
 0x325   : > { %v1040_v37 = vsel %vm1039_vm14, %v1303_v61, %v1036_v31 }
 0x326   : > { %1128 = vmatpush.msrb.mxu1 %v1061_v35  ;;  %v1045_v22 = vsel %vm1042_vm1, %v1044_v34, %v1040_v37  ;;  %v1010_v38 = vsel %vm1009_vm0, %v1305_v4, %v1006_v36 }
 0x327   : > { %v1046_v39 = vmul.f32 %v1835_v7, %v1045_v22  ;;  %v1015_v40 = vsel %vm1012_vm3, %v1014_v47, %v1010_v38 }
 0x328   : > { %v1016_v41 = vmul.f32 %v1837_v8, %v1015_v40 }
 0x329   : > { %1129 = vmatpush.msrb.mxu1 %v1046_v39 }
 0x32b   : > { %1130 = vmatpush.msrb.mxu1 %v1031_v1 }
 0x32d   : > { %1131 = vmatpush.msrb.mxu1 %v1016_v41 }
 0x32e   : > { %1246 = vmatmul.msk.f32.vlgmr.msrb.gmra.mxu1 %vm1108_vm4, %v1107_v14 }
 0x3ab   : > { %v1133_v7 = vpop.f32.mrf.mxu1 }
 0x3ac   : > { %1136 = vst.msk [vmem:[%s424_s19] sm:$0x3] %vm956_vm5, %v1133_v7 }
 0x3ad PF: > { %s21_s17 = sadd.s32 1, %s1312_s17  }
 0x3ae   : > { %p18_p4 = scmp.ge.s32.totalorder %s21_s17, 4  }
 0x3b0   :  { %20 = sbr.rel (!%p18_p4) target bundleno = 1 (0x1), region = 100 }

</bundles_post_ra>
